<compile_context>
chip_gen: v5e
topology: v5e:2x2
jax: 0.10.0
libtpu: 0.0.40
codegen_flags: <defaults>
</compile_context>

<pallas_src>
import jax
import jax.numpy as jnp
from jax.experimental import pallas as pl
from jax.experimental.pallas import tpu as pltpu


def _linear_attention_kernel(x_ref, wq_ref, wk_ref, wv_ref, wo_ref, b_ref,
                             mask_ref, o_ref):
    # x_ref   : (c, n)           one batch element, bf16, spatial on lanes
    # wq/wk/wv: (hidden, c)      bf16 (scale folded into wq)
    # wo_ref  : (c, hidden)      bf16
    # b_ref   : (c, 1)           f32
    # mask_ref: (hidden, hidden) f32 block-diagonal head mask
    # o_ref   : (c, n)           f32
    x = x_ref[...]                                                      # (c, n) bf16

    # Fused qkv 1x1-conv: three lane-dense matmuls, f32 accumulation.
    q = jnp.dot(wq_ref[...], x, preferred_element_type=jnp.float32)    # (hidden, n)
    k = jnp.dot(wk_ref[...], x, preferred_element_type=jnp.float32)    # (hidden, n)
    v = jnp.dot(wv_ref[...], x, preferred_element_type=jnp.float32)    # (hidden, n)

    # Softmax over spatial positions (lane axis) per channel row, f32,
    # un-normalized: the 1/denominator is folded into the small context below.
    k = k - jnp.max(k, axis=1, keepdims=True)
    exp_k = jnp.exp(k)
    denom = jnp.sum(exp_k, axis=1, keepdims=True)                      # (hidden, 1)

    # context_raw[d, e] = sum_n exp_k[d, n] * v[e, n]   (all heads at once)
    context_raw = jax.lax.dot_general(
        exp_k.astype(jnp.bfloat16), v.astype(jnp.bfloat16),
        (((1,), (1,)), ((), ())), preferred_element_type=jnp.float32)  # (hidden, hidden)

    # Block-diagonal head mask + softmax denominator (per row d), tiny tensor.
    context = context_raw * (mask_ref[...] * pl.reciprocal(denom, approx=True))

    # out_all[e, n] = sum_d context[d, e] * q[d, n]
    out_all = jax.lax.dot_general(
        context.astype(jnp.bfloat16), q.astype(jnp.bfloat16),
        (((0,), (0,)), ((), ())), preferred_element_type=jnp.float32)  # (hidden, n)

    # Output 1x1 conv + bias.
    y = jnp.dot(wo_ref[...], out_all.astype(jnp.bfloat16),
                preferred_element_type=jnp.float32)                    # (c, n)
    o_ref[...] = (y + b_ref[...]).astype(o_ref.dtype)


def linear_attention(x, w_qkv, w_out, b_out, *, heads=4, dim_head=32):
    """Fused LinearAttention forward.

    x     : (b, c, h, w)           NCHW input
    w_qkv : (3*heads*dim_head, c)  == to_qkv.weight[:, :, 0, 0]
    w_out : (c, heads*dim_head)    == to_out.weight[:, :, 0, 0]
    b_out : (c,)                   == to_out.bias
    returns (b, c, h, w) float32
    """
    b, c, hh, ww = x.shape
    hidden = heads * dim_head
    n = hh * ww
    scale = dim_head ** (-0.5)

    assert w_qkv.shape == (3 * hidden, c)
    assert w_out.shape == (c, hidden)
    assert b_out.shape == (c,)

    # NCHW -> (b, c, n): channels on sublanes, spatial on lanes (free reshape).
    x_cn = x.reshape(b, c, n).astype(jnp.bfloat16)

    # Split qkv weight, fold the q scale, keep matmul operands in bf16.
    wq, wk, wv = jnp.split(w_qkv, 3, axis=0)                   # each (hidden, c)
    wq = (wq.astype(jnp.float32) * scale).astype(jnp.bfloat16)
    wk = wk.astype(jnp.bfloat16)
    wv = wv.astype(jnp.bfloat16)
    wo = w_out.astype(jnp.bfloat16)                            # (c, hidden)
    bo = b_out.astype(jnp.float32).reshape(c, 1)

    # Block-diagonal head mask for the fused (hidden x hidden) context.
    head_ids = jnp.arange(hidden) // dim_head
    mask = (head_ids[:, None] == head_ids[None, :]).astype(jnp.float32)

    out_cn = pl.pallas_call(
        _linear_attention_kernel,
        out_shape=jax.ShapeDtypeStruct((b, c, n), jnp.float32),
        grid=(b,),
        in_specs=[
            pl.BlockSpec((None, c, n), lambda i: (i, 0, 0)),       # x (per batch)
            pl.BlockSpec((hidden, c), lambda i: (0, 0)),           # Wq (scaled)
            pl.BlockSpec((hidden, c), lambda i: (0, 0)),           # Wk
            pl.BlockSpec((hidden, c), lambda i: (0, 0)),           # Wv
            pl.BlockSpec((c, hidden), lambda i: (0, 0)),           # Wout
            pl.BlockSpec((c, 1), lambda i: (0, 0)),                # bias
            pl.BlockSpec((hidden, hidden), lambda i: (0, 0)),      # head mask
        ],
        out_specs=pl.BlockSpec((None, c, n), lambda i: (i, 0, 0)),
        compiler_params=pltpu.CompilerParams(
            dimension_semantics=("parallel",),
            vmem_limit_bytes=48 * 1024 * 1024),
    )(x_cn, wq, wk, wv, wo, bo, mask)

    return out_cn.reshape(b, c, hh, ww)


def linear_attention_ref(x, w_qkv, w_out, b_out, *, heads=4, dim_head=32):
    """Pure-JAX f32 reference mirroring the PyTorch forward."""
    b, c, hh, ww = x.shape
    n = hh * ww
    hidden = heads * dim_head
    scale = dim_head ** (-0.5)

    x_flat = x.astype(jnp.float32).reshape(b, c, n)                  # (b, c, n)
    qkv = jnp.einsum('oc,bcn->bon', w_qkv.astype(jnp.float32), x_flat)
    q, k, v = jnp.split(qkv, 3, axis=1)
    q = q.reshape(b, heads, dim_head, n) * scale
    k = jax.nn.softmax(k.reshape(b, heads, dim_head, n), axis=-1)
    v = v.reshape(b, heads, dim_head, n)
    context = jnp.einsum('bhdn,bhen->bhde', k, v)
    out = jnp.einsum('bhde,bhdn->bhen', context, q)                  # (b, h, e, n)
    out = out.reshape(b, hidden, n)
    out = jnp.einsum('oc,bcn->bon', w_out.astype(jnp.float32), out)
    out = out + b_out.astype(jnp.float32)[None, :, None]
    return out.reshape(b, c, hh, ww)


if __name__ == "__main__":
    key = jax.random.PRNGKey(0)
    k1, k2, k3, k4 = jax.random.split(key, 4)

    B, C, H, W = 2, 8, 16, 16        # batch=2, channels(dim)=8, spatial 16x16 -> n=256
    heads, dim_head = 4, 32          # module defaults -> hidden_dim = 128
    hidden = heads * dim_head

    x = jax.random.normal(k1, (B, C, H, W), dtype=jnp.float32)
    w_qkv = jax.random.normal(k2, (3 * hidden, C), dtype=jnp.float32) * 0.05
    w_out = jax.random.normal(k3, (C, hidden), dtype=jnp.float32) * 0.05
    b_out = jax.random.normal(k4, (C,), dtype=jnp.float32) * 0.1

    out = linear_attention(x, w_qkv, w_out, b_out, heads=heads, dim_head=dim_head)
    out = jax.block_until_ready(out)

    ref = linear_attention_ref(x, w_qkv, w_out, b_out, heads=heads, dim_head=dim_head)
    assert out.shape == (B, C, H, W)
    max_err = float(jnp.max(jnp.abs(out - ref)))
    # bf16 matmul operands + approx reciprocal -> relaxed tolerance vs f32 ref.
    assert jnp.allclose(out, ref, atol=1e-2, rtol=1e-2), f"max abs err {max_err}"

    print("KERNEL_OK")
</pallas_src>

<mosaic_0001>
module attributes {stable_mosaic.version = 11 : i64} {
  func.func @_linear_attention_kernel(%arg0: i32, %arg1: memref<1x8x256xbf16, #tpu.memory_space<vmem>>, %arg2: memref<128x8xbf16, #tpu.memory_space<vmem>>, %arg3: memref<128x8xbf16, #tpu.memory_space<vmem>>, %arg4: memref<128x8xbf16, #tpu.memory_space<vmem>>, %arg5: memref<8x128xbf16, #tpu.memory_space<vmem>>, %arg6: memref<8x1xf32, #tpu.memory_space<vmem>>, %arg7: memref<128x128xf32, #tpu.memory_space<vmem>>, %arg8: memref<1x8x256xf32, #tpu.memory_space<vmem>>) attributes {dimension_semantics = [#tpu.dimension_semantics<parallel>], iteration_bounds = array<i64: 2>, scalar_prefetch = 0 : i64, scratch_operands = 0 : i64, tpu.core_type = #tpu.core_type<tc>, window_params = [{transform_indices = @transform_0, window_bounds = array<i64: 1, 8, 256>}, {pipeline_mode = #tpu.pipeline_mode<synchronous>, transform_indices = @transform_1, window_bounds = array<i64: 128, 8>}, {pipeline_mode = #tpu.pipeline_mode<synchronous>, transform_indices = @transform_2, window_bounds = array<i64: 128, 8>}, {pipeline_mode = #tpu.pipeline_mode<synchronous>, transform_indices = @transform_3, window_bounds = array<i64: 128, 8>}, {pipeline_mode = #tpu.pipeline_mode<synchronous>, transform_indices = @transform_4, window_bounds = array<i64: 8, 128>}, {pipeline_mode = #tpu.pipeline_mode<synchronous>, transform_indices = @transform_5, window_bounds = array<i64: 8, 1>}, {pipeline_mode = #tpu.pipeline_mode<synchronous>, transform_indices = @transform_6, window_bounds = array<i64: 128, 128>}, {transform_indices = @transform_7, window_bounds = array<i64: 1, 8, 256>}]} {
    %c0 = arith.constant 0 : index
    %c0_0 = arith.constant 0 : index
    %c0_1 = arith.constant 0 : index
    %0 = vector.load %arg1[%c0, %c0_0, %c0_1] : memref<1x8x256xbf16, #tpu.memory_space<vmem>>, vector<1x8x256xbf16>
    %1 = vector.shape_cast %0 : vector<1x8x256xbf16> to vector<8x256xbf16>
    %c0_2 = arith.constant 0 : index
    %c0_3 = arith.constant 0 : index
    %2 = vector.load %arg2[%c0_2, %c0_3] : memref<128x8xbf16, #tpu.memory_space<vmem>>, vector<128x8xbf16>
    %cst = arith.constant dense<0.000000e+00> : vector<128x256xf32>
    %3 = tpu.matmul %2, %1, %cst {dimension_numbers = #tpu.dot_dimension_numbers<[1], [0], [0], [1], [0, 0, 1, 1], [], []>} : vector<128x8xbf16>, vector<8x256xbf16>, vector<128x256xf32> -> vector<128x256xf32>
    %c0_4 = arith.constant 0 : index
    %c0_5 = arith.constant 0 : index
    %4 = vector.load %arg3[%c0_4, %c0_5] : memref<128x8xbf16, #tpu.memory_space<vmem>>, vector<128x8xbf16>
    %cst_6 = arith.constant dense<0.000000e+00> : vector<128x256xf32>
    %5 = tpu.matmul %4, %1, %cst_6 {dimension_numbers = #tpu.dot_dimension_numbers<[1], [0], [0], [1], [0, 0, 1, 1], [], []>} : vector<128x8xbf16>, vector<8x256xbf16>, vector<128x256xf32> -> vector<128x256xf32>
    %c0_7 = arith.constant 0 : index
    %c0_8 = arith.constant 0 : index
    %6 = vector.load %arg4[%c0_7, %c0_8] : memref<128x8xbf16, #tpu.memory_space<vmem>>, vector<128x8xbf16>
    %cst_9 = arith.constant dense<0.000000e+00> : vector<128x256xf32>
    %7 = tpu.matmul %6, %1, %cst_9 {dimension_numbers = #tpu.dot_dimension_numbers<[1], [0], [0], [1], [0, 0, 1, 1], [], []>} : vector<128x8xbf16>, vector<8x256xbf16>, vector<128x256xf32> -> vector<128x256xf32>
    %cst_10 = arith.constant dense<0xFF800000> : vector<128xf32>
    %8 = vector.multi_reduction <maximumf>, %5, %cst_10 [1] : vector<128x256xf32> to vector<128xf32>
    %9 = vector.shape_cast %8 : vector<128xf32> to vector<128x1xf32>
    %10 = vector.broadcast %9 : vector<128x1xf32> to vector<128x256xf32>
    %11 = arith.subf %5, %10 : vector<128x256xf32>
    %12 = math.exp %11 : vector<128x256xf32>
    %cst_11 = arith.constant dense<0.000000e+00> : vector<128xf32>
    %13 = vector.multi_reduction <add>, %12, %cst_11 [1] : vector<128x256xf32> to vector<128xf32>
    %14 = vector.shape_cast %13 : vector<128xf32> to vector<128x1xf32>
    %15 = arith.truncf %12 : vector<128x256xf32> to vector<128x256xbf16>
    %16 = arith.truncf %7 : vector<128x256xf32> to vector<128x256xbf16>
    %cst_12 = arith.constant dense<0.000000e+00> : vector<128x128xf32>
    %17 = tpu.matmul %15, %16, %cst_12 {dimension_numbers = #tpu.dot_dimension_numbers<[1], [1], [0], [0], [0, 0, 1, 0], [], []>} : vector<128x256xbf16>, vector<128x256xbf16>, vector<128x128xf32> -> vector<128x128xf32>
    %c0_13 = arith.constant 0 : index
    %c0_14 = arith.constant 0 : index
    %18 = vector.load %arg7[%c0_13, %c0_14] : memref<128x128xf32, #tpu.memory_space<vmem>>, vector<128x128xf32>
    %19 = tpu.reciprocal %14 {approx = true} : vector<128x1xf32> -> vector<128x1xf32>
    %20 = vector.broadcast %19 : vector<128x1xf32> to vector<128x128xf32>
    %21 = arith.mulf %18, %20 : vector<128x128xf32>
    %22 = arith.mulf %17, %21 : vector<128x128xf32>
    %23 = arith.truncf %22 : vector<128x128xf32> to vector<128x128xbf16>
    %24 = arith.truncf %3 : vector<128x256xf32> to vector<128x256xbf16>
    %cst_15 = arith.constant dense<0.000000e+00> : vector<128x256xf32>
    %25 = tpu.matmul %23, %24, %cst_15 {dimension_numbers = #tpu.dot_dimension_numbers<[0], [0], [1], [1], [0, 1, 1, 1], [], []>} : vector<128x128xbf16>, vector<128x256xbf16>, vector<128x256xf32> -> vector<128x256xf32>
    %c0_16 = arith.constant 0 : index
    %c0_17 = arith.constant 0 : index
    %26 = vector.load %arg5[%c0_16, %c0_17] : memref<8x128xbf16, #tpu.memory_space<vmem>>, vector<8x128xbf16>
    %27 = arith.truncf %25 : vector<128x256xf32> to vector<128x256xbf16>
    %cst_18 = arith.constant dense<0.000000e+00> : vector<8x256xf32>
    %28 = tpu.matmul %26, %27, %cst_18 {dimension_numbers = #tpu.dot_dimension_numbers<[1], [0], [0], [1], [0, 0, 1, 1], [], []>} : vector<8x128xbf16>, vector<128x256xbf16>, vector<8x256xf32> -> vector<8x256xf32>
    %c0_19 = arith.constant 0 : index
    %c0_20 = arith.constant 0 : index
    %29 = vector.load %arg6[%c0_19, %c0_20] : memref<8x1xf32, #tpu.memory_space<vmem>>, vector<8x1xf32>
    %30 = vector.broadcast %29 : vector<8x1xf32> to vector<8x256xf32>
    %31 = arith.addf %28, %30 : vector<8x256xf32>
    %c0_21 = arith.constant 0 : index
    %c0_22 = arith.constant 0 : index
    %c0_23 = arith.constant 0 : index
    %32 = vector.load %arg8[%c0_21, %c0_22, %c0_23] : memref<1x8x256xf32, #tpu.memory_space<vmem>>, vector<1x8x256xf32>
    %33 = vector.shape_cast %32 : vector<1x8x256xf32> to vector<8x256xf32>
    %34 = vector.shape_cast %31 : vector<8x256xf32> to vector<1x8x256xf32>
    tpu.vector_store %arg8[%c0_21, %c0_22, %c0_23], %34 {strides = array<i32>} : memref<1x8x256xf32, #tpu.memory_space<vmem>>, vector<1x8x256xf32>,
    return
  }
  func.func @transform_0(%arg0: i32) -> (i32, i32, i32) {
    %c0_i32 = arith.constant 0 : i32
    %c0_i32_0 = arith.constant 0 : i32
    %c0_i32_1 = arith.constant 0 : i32
    return %arg0, %c0_i32, %c0_i32_0 : i32, i32, i32
  }
  func.func @transform_1(%arg0: i32) -> (i32, i32) {
    %c0_i32 = arith.constant 0 : i32
    %c0_i32_0 = arith.constant 0 : i32
    %c0_i32_1 = arith.constant 0 : i32
    return %c0_i32, %c0_i32_0 : i32, i32
  }
  func.func @transform_2(%arg0: i32) -> (i32, i32) {
    %c0_i32 = arith.constant 0 : i32
    %c0_i32_0 = arith.constant 0 : i32
    %c0_i32_1 = arith.constant 0 : i32
    return %c0_i32, %c0_i32_0 : i32, i32
  }
  func.func @transform_3(%arg0: i32) -> (i32, i32) {
    %c0_i32 = arith.constant 0 : i32
    %c0_i32_0 = arith.constant 0 : i32
    %c0_i32_1 = arith.constant 0 : i32
    return %c0_i32, %c0_i32_0 : i32, i32
  }
  func.func @transform_4(%arg0: i32) -> (i32, i32) {
    %c0_i32 = arith.constant 0 : i32
    %c0_i32_0 = arith.constant 0 : i32
    %c0_i32_1 = arith.constant 0 : i32
    return %c0_i32, %c0_i32_0 : i32, i32
  }
  func.func @transform_5(%arg0: i32) -> (i32, i32) {
    %c0_i32 = arith.constant 0 : i32
    %c0_i32_0 = arith.constant 0 : i32
    %c0_i32_1 = arith.constant 0 : i32
    return %c0_i32, %c0_i32_0 : i32, i32
  }
  func.func @transform_6(%arg0: i32) -> (i32, i32) {
    %c0_i32 = arith.constant 0 : i32
    %c0_i32_0 = arith.constant 0 : i32
    %c0_i32_1 = arith.constant 0 : i32
    return %c0_i32, %c0_i32_0 : i32, i32
  }
  func.func @transform_7(%arg0: i32) -> (i32, i32, i32) {
    %c0_i32 = arith.constant 0 : i32
    %c0_i32_0 = arith.constant 0 : i32
    %c0_i32_1 = arith.constant 0 : i32
    return %arg0, %c0_i32, %c0_i32_0 : i32, i32, i32
  }
}

</mosaic_0001>

<bundles_post_ra>
// kernel: tpu_custom_call.1
= control target key start
LH: loop header
LB: loop body
LE: loop exit
PB: predicated region body
PF: predicated region fallthrough
CT: control target
= control target key end

     0   :  { %12 = vsyncpa [#allocation3], 0  ;;  %s2616_s0 = inlined_call_operand.vmem [shape: bf16[2,8,256], index: 0, kind: input, shape index: {}]   ;;  %s2617_s1 = inlined_call_operand.vmem [shape: bf16[128,8], index: 1, kind: input, shape index: {}]   ;;  %s2618_s2 = inlined_call_operand.vmem [shape: bf16[128,8], index: 2, kind: input, shape index: {}]   ;;  %s2619_s3 = inlined_call_operand.vmem [shape: bf16[128,8], index: 3, kind: input, shape index: {}]   ;;  %s2620_s4 = inlined_call_operand.vmem [shape: bf16[8,128], index: 4, kind: input, shape index: {}]   ;;  %s2621_s5 = inlined_call_operand.vmem [shape: f32[8,1], index: 5, kind: input, shape index: {}]   ;;  %s2622_s6 = inlined_call_operand.vmem [shape: f32[128,128], index: 6, kind: input, shape index: {}]   ;;  %s2623_s7 = inlined_call_operand.hbm [shape: f32[2,8,256], index: 7, kind: output, shape index: {}]  }
   0x1   :  { %14 = vsyncpa [#allocation3 + $0x1], 0  ;;  %s1962_s24 = smov 0   ;;  %s1964_s25 = smov 0  }
   0x2   :  { %s1966_s26 = smov 0   ;;  %s1968_s27 = smov 0  }
   0x3 LB: > { %s1983_s28 = sadd.s32 4294967295, %s1917_s27   ;;  %s1477_s29 = sadd.s32 4294967294, %s1917_s27   ;;  %s1917_s27 = sphi %s1968_s27, %s2652_s27   ;;  %s1913_s26 = sphi %s1966_s26, %s2651_s26   ;;  %s1909_s25 = sphi %s1964_s25, %s2650_s25   ;;  %s1905_s24 = sphi %s1962_s24, %s2649_s24  }
   0x4   : > { %s1987_s30 = sadd.s32 1, %s1917_s27   ;;  %s179_s8 = sadd.s32 1, %s1913_s26 }
   0x5   : > { %s176_s9 = ssub.s32 %s1917_s27, %s1987_s30  ;;  %p189_p0 = scmp.ne.s32.totalorder %s1913_s26, %s1909_s25 }
   0x6   : > { %p177_p1 = scmp.eq.s32.totalorder %s176_s9, 0  ;;  %p190_p2 = scmp.eq.s32.totalorder %s1983_s28, 1 }
   0x7   : > { %p195_p3 = scmp.ne.s32.totalorder %s1909_s25, %s1905_s24  ;;  %p196_p4 = scmp.eq.s32.totalorder %s1477_s29, 1 }
   0x8   : > { %s1998_s10 = scalar_select %p177_p1, %s1913_s26, %s179_s8  }
   0x9   : > { %p2000_p5 = por %p190_p2, %p189_p0  ;;  %p2004_p6 = por %p196_p4, %p195_p3 }
   0xa   : > { %p1480_p7 = scmp.ge.s32.totalorder %s1917_s27, 1  ;;  %p240_p8 = scmp.lt.s32.totalorder %s1917_s27, 3 }
   0xc   : > { %p241_p9 = pnand %p1480_p7, %p240_p8 }
   0xe   : > { %244 = sbr.rel (%p241_p9) target bundleno = 1167 (0x48f), region = 48 }
  0x13   : > { %p272_p10 = scmp.lt.s32.totalorder %s1983_s28, 1  ;;  %vm365_vm0 = vcmask 1043456   ;;  %v1634_v7 = vld [vmem:[%s2617_s1] sm:$0xff]  ;;  %v1639_v8 = vld [vmem:[%s2617_s1 + $0x28] sm:$0xff]  ;;  %vm340_vm1 = vcmask 64512   ;;  %v1640_v10 = vld [vmem:[%s2617_s1 + $0x30] sm:$0xff] }
  0x14   : > { %v1635_v9 = vld [vmem:[%s2617_s1 + $0x8] sm:$0xff]  ;;  %v1636_v11 = vld [vmem:[%s2617_s1 + $0x10] sm:$0xff]  ;;  %v1641_v12 = vld [vmem:[%s2617_s1 + $0x38] sm:$0xff]  ;;  %s269_s18 = sand.u32 1, %s1909_s25   ;;  %s1658_s19 = sshll.u32 %s1983_s28, 4 }
  0x15   : > { %s273_s13 = scalar_select %p272_p10, %s1983_s28, 1  ;;  %v1637_v13 = vld [vmem:[%s2617_s1 + $0x18] sm:$0xff]  ;;  %v1642_v14 = vld [vmem:[%s2618_s2] sm:$0xff]  ;;  %v1643_v16 = vld [vmem:[%s2618_s2 + $0x8] sm:$0xff] }
  0x16   : > { %v1638_v15 = vld [vmem:[%s2617_s1 + $0x20] sm:$0xff]  ;;  %v1644_v17 = vld [vmem:[%s2618_s2 + $0x10] sm:$0xff]  ;;  %v1645_v19 = vld [vmem:[%s2618_s2 + $0x18] sm:$0xff]  ;;  %s1481_s20 = sshll.u32 %s269_s18, 4  ;;  %s1413_s23 = scalar_lea.hbm %s2623_s7, %s1658_s19 }
  0x17   : > { %s1633_s14 = sshll.u32 %s273_s13, 3  ;;  %v1650_v18 = vld [vmem:[%s2619_s3] sm:$0xff]  ;;  %v1651_v20 = vld [vmem:[%s2619_s3 + $0x8] sm:$0xff]  ;;  %v1652_v22 = vld [vmem:[%s2619_s3 + $0x10] sm:$0xff]  ;;  %s271_s29 = scalar_lea.vmem [#allocation2], %s1481_s20 }
  0x18   : > { %s276_s17 = scalar_lea.vmem %s2616_s0, %s1633_s14  ;;  %v1646_v21 = vld [vmem:[%s2618_s2 + $0x20] sm:$0xff]  ;;  %v1647_v23 = vld [vmem:[%s2618_s2 + $0x28] sm:$0xff]  ;;  %v1653_v24 = vld [vmem:[%s2619_s3 + $0x18] sm:$0xff]  ;;  %s1415_s8 = sshll.u32 %s271_s29, 4  ;;  %s1416_s8 = int_to_ptr.vmem [resolvable:$true] %s1415_s8 }
  0x19   : > { %v278_v0 = vld [vmem:[%s276_s17] sm:$0xff]  ;;  %v1648_v35 = vld [vmem:[%s2618_s2 + $0x30] sm:$0xff]  ;;  %v1649_v45 = vld [vmem:[%s2618_s2 + $0x38] sm:$0xff]  ;;  %s1417_s9 = sshll.u32 %s1413_s23, 4  ;;  %s1402_s13 = scalar_lea.sflag [#allocation3], %s269_s18  ;;  %s1418_s9 = int_to_ptr.hbm [resolvable:$true] %s1417_s9 }
  0x1a   : > { %v336_v1 = vunpack.c.l.b16 %v278_v0  ;;  %v337_v2 = vunpack.c.h.b16 %v278_v0  ;;  %v1654_v36 = vld [vmem:[%s2619_s3 + $0x20] sm:$0xff]  ;;  %v1655_v46 = vld [vmem:[%s2619_s3 + $0x28] sm:$0xff]  ;;  %v1656_v56 = vld [vmem:[%s2619_s3 + $0x30] sm:$0xff]  ;;  %s1869_s28 = sshra.s32 %s1418_s9, 4  ;;  %s1875_s17 = scalar_lea.hbm %s2623_s7, 32  ;;  %s1870_s28 = int_to_ptr.hbm [resolvable:$true] %s1869_s28 }
  0x1b   : > { %s1871_s14 = scalar_lea.hbm %s1870_s28, 16  ;;  %p1876_p0 = scmp.lt.s32.totalorder %s1870_s28, %s2623_s7 }
  0x1c   : > { %v338_v3 = vpack.c.b16 %v336_v1, %v336_v1  ;;  %v339_v4 = vpack.c.b16 %v337_v2, %v337_v2  ;;  %p1872_p11 = scmp.ne.s32.totalorder %s1870_s28, %s1871_s14  ;;  %p1877_p1 = scmp.lt.s32.totalorder %s1875_s17, %s1871_s14 }
  0x1e   : > { %v367_v5 = vsel %vm365_vm0, %v338_v3, 0  ;;  %v370_v6 = vsel %vm365_vm0, %v339_v4, 0  ;;  %p1873_p12 = pnand %p1872_p11, %p2000_p5  ;;  %p1878_p2 = por %p1877_p1, %p1876_p0 }
  0x1f   : > { %379 = vmatpush.bf16.msra.mxu0 %v367_v5  ;;  %1659 = vmatpush.bf16.msra.mxu2 %v367_v5 }
  0x20   : > { %428 = vmatpush.bf16.msra.mxu1 %v370_v6  ;;  %1660 = vmatpush.bf16.msra.mxu3 %v370_v6  ;;  %p1874_p13 = pneg %p1873_p12 }
  0x22   : > { %1516 = vmatmul.msk.bf16.vlgmr.msra.gmra.mxu0 %vm340_vm1, %v1634_v7  ;;  %1521 = vmatmul.msk.bf16.vlgmr.msra.gmra.mxu2 %vm340_vm1, %v1639_v8  ;;  %p1879_p3 = pnand %p1878_p2, %p1874_p13 }
  0x23   : > { %557 = vmatpush.bf16.msrb.mxu2 %v367_v5  ;;  %1524 = vmatmul.msk.bf16.vlgmr.msra.gmra.mxu1 %vm340_vm1, %v1634_v7  ;;  %v1657_v7 = vld [vmem:[%s2619_s3 + $0x38] sm:$0xff] }
  0x24   : > { %606 = vmatpush.bf16.msrb.mxu3 %v370_v6  ;;  %735 = vmatpush.bf16.msra.mxu0 %v367_v5 }
  0x25   : > { %1529 = vmatmul.msk.bf16.vlgmr.msra.gmra.mxu3 %vm340_vm1, %v1639_v8  ;;  %784 = vmatpush.bf16.msra.mxu1 %v370_v6 }
  0x32   : > { %1517 = vmatmul.msk.bf16.gmra.mxu0 %vm340_vm1, %v1635_v9  ;;  %1522 = vmatmul.msk.bf16.gmra.mxu2 %vm340_vm1, %v1640_v10 }
  0x33   : > { %1525 = vmatmul.msk.bf16.gmra.mxu1 %vm340_vm1, %v1635_v9 }
  0x35   : > { %1530 = vmatmul.msk.bf16.gmra.mxu3 %vm340_vm1, %v1640_v10 }
  0x42   : > { %1518 = vmatmul.msk.bf16.gmra.mxu0 %vm340_vm1, %v1636_v11  ;;  %1523 = vmatmul.msk.bf16.gmra.mxu2 %vm340_vm1, %v1641_v12 }
  0x43   : > { %1526 = vmatmul.msk.bf16.gmra.mxu1 %vm340_vm1, %v1636_v11 }
  0x45   : > { %1531 = vmatmul.msk.bf16.gmra.mxu3 %vm340_vm1, %v1641_v12 }
  0x52   : > { %1519 = vmatmul.msk.bf16.gmra.mxu0 %vm340_vm1, %v1637_v13  ;;  %1564 = vmatmul.msk.bf16.vlgmr.msrb.gmra.mxu2 %vm340_vm1, %v1642_v14 }
  0x53   : > { %1527 = vmatmul.msk.bf16.gmra.mxu1 %vm340_vm1, %v1637_v13 }
  0x55   : > { %1572 = vmatmul.msk.bf16.vlgmr.msrb.gmra.mxu3 %vm340_vm1, %v1642_v14 }
  0x62   : > { %1520 = vmatmul.msk.bf16.gmra.mxu0 %vm340_vm1, %v1638_v15  ;;  %1565 = vmatmul.msk.bf16.gmra.mxu2 %vm340_vm1, %v1643_v16 }
  0x63   : > { %1528 = vmatmul.msk.bf16.gmra.mxu1 %vm340_vm1, %v1638_v15 }
  0x65   : > { %1573 = vmatmul.msk.bf16.gmra.mxu3 %vm340_vm1, %v1643_v16 }
  0x72   : > { %1566 = vmatmul.msk.bf16.gmra.mxu2 %vm340_vm1, %v1644_v17  ;;  %1612 = vmatmul.msk.bf16.vlgmr.msra.gmra.mxu0 %vm340_vm1, %v1650_v18 }
  0x73   : > { %1620 = vmatmul.msk.bf16.vlgmr.msra.gmra.mxu1 %vm340_vm1, %v1650_v18 }
  0x75   : > { %1574 = vmatmul.msk.bf16.gmra.mxu3 %vm340_vm1, %v1644_v17 }
  0x82   : > { %1567 = vmatmul.msk.bf16.gmra.mxu2 %vm340_vm1, %v1645_v19  ;;  %1613 = vmatmul.msk.bf16.gmra.mxu0 %vm340_vm1, %v1651_v20 }
  0x83   : > { %1621 = vmatmul.msk.bf16.gmra.mxu1 %vm340_vm1, %v1651_v20 }
  0x85   : > { %1575 = vmatmul.msk.bf16.gmra.mxu3 %vm340_vm1, %v1645_v19 }
  0x92   : > { %1568 = vmatmul.msk.bf16.gmra.mxu2 %vm340_vm1, %v1646_v21  ;;  %1614 = vmatmul.msk.bf16.gmra.mxu0 %vm340_vm1, %v1652_v22 }
  0x93   : > { %1622 = vmatmul.msk.bf16.gmra.mxu1 %vm340_vm1, %v1652_v22 }
  0x95   : > { %1576 = vmatmul.msk.bf16.gmra.mxu3 %vm340_vm1, %v1646_v21 }
  0x9f   : > { %v2101_v25 = vpop.f32.mrf.mxu0 }
  0xa0   : > { %v2103_v26 = vpop.f32.mrf.mxu1 }
  0xa2   : > { %1569 = vmatmul.msk.bf16.gmra.mxu2 %vm340_vm1, %v1647_v23  ;;  %1615 = vmatmul.msk.bf16.gmra.mxu0 %vm340_vm1, %v1653_v24 }
  0xa3   : > { %1623 = vmatmul.msk.bf16.gmra.mxu1 %vm340_vm1, %v1653_v24 }
  0xa5   : > { %1577 = vmatmul.msk.bf16.gmra.mxu3 %vm340_vm1, %v1647_v23  ;;  %v406_v27 = vpop.f32.mrf.mxu2 }
  0xa7   : > { %v2109_v29 = vpop.f32.mrf.mxu0 }
  0xa8   : > { %v455_v28 = vpop.f32.mrf.mxu3  ;;  %v1220_v30 = vpack.c.bf16 %v2109_v29, %v2101_v25  ;;  %v2113_v31 = vpop.f32.mrf.mxu1 }
  0xa9   : > { %v1221_v32 = vpack.c.bf16 %v2113_v31, %v2103_v26 }
  0xad   : > { %v408_v33 = vpop.f32.mrf.mxu2 }
  0xae   : > { %v1230_v62 = vpack.c.bf16 %v408_v33, %v406_v27 }
  0xaf   : > { %v2123_v37 = vpop.f32.mrf.mxu0 }
  0xb0   : > { %v457_v34 = vpop.f32.mrf.mxu3  ;;  %v2125_v38 = vpop.f32.mrf.mxu1 }
  0xb1   : > { %v1231_v63 = vpack.c.bf16 %v457_v34, %v455_v28 }
  0xb2   : > { %1570 = vmatmul.msk.bf16.gmra.mxu2 %vm340_vm1, %v1648_v35  ;;  %1616 = vmatmul.msk.bf16.gmra.mxu0 %vm340_vm1, %v1654_v36 }
  0xb3   : > { %1624 = vmatmul.msk.bf16.gmra.mxu1 %vm340_vm1, %v1654_v36 }
  0xb5   : > { %1578 = vmatmul.msk.bf16.gmra.mxu3 %vm340_vm1, %v1648_v35  ;;  %v411_v39 = vpop.f32.mrf.mxu2 }
  0xb7   : > { %v2131_v41 = vpop.f32.mrf.mxu0 }
  0xb8   : > { %v460_v40 = vpop.f32.mrf.mxu3  ;;  %v2133_v42 = vpop.f32.mrf.mxu1  ;;  %v1222_v33 = vpack.c.bf16 %v2131_v41, %v2123_v37 }
  0xb9   : > { %v1223_v34 = vpack.c.bf16 %v2133_v42, %v2125_v38 }
  0xbd   : > { %v413_v43 = vpop.f32.mrf.mxu2 }
  0xbe   : > { %v1232_v59 = vpack.c.bf16 %v413_v43, %v411_v39 }
  0xbf   : > { %v2141_v47 = vpop.f32.mrf.mxu0 }
  0xc0   : > { %v462_v44 = vpop.f32.mrf.mxu3  ;;  %v2143_v48 = vpop.f32.mrf.mxu1 }
  0xc1   : > { %v1233_v61 = vpack.c.bf16 %v462_v44, %v460_v40 }
  0xc2   : > { %1571 = vmatmul.msk.bf16.gmra.mxu2 %vm340_vm1, %v1649_v45  ;;  %1617 = vmatmul.msk.bf16.gmra.mxu0 %vm340_vm1, %v1655_v46 }
  0xc3   : > { %1625 = vmatmul.msk.bf16.gmra.mxu1 %vm340_vm1, %v1655_v46 }
  0xc5   : > { %1579 = vmatmul.msk.bf16.gmra.mxu3 %vm340_vm1, %v1649_v45  ;;  %v416_v49 = vpop.f32.mrf.mxu2 }
  0xc7   : > { %v393_v51 = vpop.f32.mrf.mxu0 }
  0xc8   : > { %v465_v50 = vpop.f32.mrf.mxu3  ;;  %v442_v52 = vpop.f32.mrf.mxu1  ;;  %v1224_v24 = vpack.c.bf16 %v393_v51, %v2141_v47 }
  0xc9   : > { %v1225_v28 = vpack.c.bf16 %v442_v52, %v2143_v48 }
  0xcd   : > { %v418_v53 = vpop.f32.mrf.mxu2 }
  0xce   : > { %v1234_v54 = vpack.c.bf16 %v418_v53, %v416_v49 }
  0xcf   : > { %v396_v58 = vpop.f32.mrf.mxu0 }
  0xd0   : > { %v467_v55 = vpop.f32.mrf.mxu3  ;;  %v445_v60 = vpop.f32.mrf.mxu1  ;;  %1252 = vmatpush.bf16.msra.mxu0 %v1234_v54 }
  0xd1   : > { %v1235_v57 = vpack.c.bf16 %v467_v55, %v465_v50 }
  0xd2   : > { %1618 = vmatmul.msk.bf16.gmra.mxu0 %vm340_vm1, %v1656_v56 }
  0xd3   : > { %1301 = vmatpush.bf16.msra.mxu1 %v1235_v57 }
  0xd4   : > { %1626 = vmatmul.msk.bf16.gmra.mxu1 %vm340_vm1, %v1656_v56  ;;  %1253 = vmatpush.bf16.msra.mxu0 %v1232_v59 }
  0xd5   : > { %v2154_v0 = vpop.f32.mrf.mxu2 }
  0xd7   : > { %1302 = vmatpush.bf16.msra.mxu1 %v1233_v61  ;;  %v398_v2 = vpop.f32.mrf.mxu0 }
  0xd8   : > { %v2156_v1 = vpop.f32.mrf.mxu3  ;;  %v447_v4 = vpop.f32.mrf.mxu1  ;;  %1254 = vmatpush.bf16.msra.mxu0 %v1230_v62  ;;  %v1226_v18 = vpack.c.bf16 %v398_v2, %v396_v58 }
  0xd9   : > { %v826_v3 = vmax.f32 %v2154_v0, %v2156_v1  ;;  %v1227_v19 = vpack.c.bf16 %v447_v4, %v445_v60 }
  0xdb   : > { %827 = vmax.xlane.f32.xlu0 %v826_v3  ;;  %1303 = vmatpush.bf16.msra.mxu1 %v1231_v63 }
  0xdd   : > { %v2160_v5 = vpop.f32.mrf.mxu2 }
  0xdf   : > { %v401_v8 = vpop.f32.mrf.mxu0 }
  0xe0   : > { %v2162_v6 = vpop.f32.mrf.mxu3  ;;  %v450_v10 = vpop.f32.mrf.mxu1 }
  0xe1   : > { %v829_v9 = vmax.f32 %v2160_v5, %v2162_v6 }
  0xe2   : > { %1619 = vmatmul.msk.bf16.gmra.mxu0 %vm340_vm1, %v1657_v7 }
  0xe3   : > { %830 = vmax.xlane.f32.xlu0 %v829_v9 }
  0xe4   : > { %1627 = vmatmul.msk.bf16.gmra.mxu1 %vm340_vm1, %v1657_v7 }
  0xe5   : > { %v2171_v11 = vpop.f32.mrf.mxu2 }
  0xe7   : > { %v403_v13 = vpop.f32.mrf.mxu0 }
  0xe8   : > { %v2173_v12 = vpop.f32.mrf.mxu3  ;;  %v1228_v15 = vpack.c.bf16 %v403_v13, %v401_v8  ;;  %v452_v16 = vpop.f32.mrf.mxu1 }
  0xe9   : > { %v832_v14 = vmax.f32 %v2171_v11, %v2173_v12  ;;  %v1229_v17 = vpack.c.bf16 %v452_v16, %v450_v10 }
  0xea   : > { %1255 = vmatpush.bf16.msra.mxu0 %v1228_v15 }
  0xeb   : > { %833 = vmax.xlane.f32.xlu1 %v832_v14  ;;  %1304 = vmatpush.bf16.msra.mxu1 %v1229_v17 }
  0xed   : > { %v2177_v20 = vpop.f32.mrf.mxu2 }
  0xee   : > { %1256 = vmatpush.bf16.msra.mxu0 %v1226_v18 }
  0xef   : > { %1305 = vmatpush.bf16.msra.mxu1 %v1227_v19  ;;  %v2181_v22 = vpop.f32.mrf.mxu0 }
  0xf0   : > { %v2179_v21 = vpop.f32.mrf.mxu3  ;;  %v2186_v27 = vpop.f32.mrf.mxu1 }
  0xf1   : > { %v835_v23 = vmax.f32 %v2177_v20, %v2179_v21 }
  0xf2   : > { %1257 = vmatpush.bf16.msra.mxu0 %v1224_v24 }
  0xf3   : > { %836 = vmax.xlane.f32.xlu1 %v835_v23  ;;  %1306 = vmatpush.bf16.msra.mxu1 %v1225_v28 }
  0xf5   : > { %v2193_v35 = vpop.f32.mrf.mxu2 }
  0xf6   : > { %1258 = vmatpush.bf16.msra.mxu0 %v1222_v33 }
  0xf7   : > { %1307 = vmatpush.bf16.msra.mxu1 %v1223_v34  ;;  %v2197_v39 = vpop.f32.mrf.mxu0 }
  0xf8   : > { %v2195_v36 = vpop.f32.mrf.mxu3  ;;  %v2201_v43 = vpop.f32.mrf.mxu1 }
  0xf9   : > { %v838_v40 = vmax.f32 %v2193_v35, %v2195_v36 }
  0xfa   : > { %1259 = vmatpush.bf16.msra.mxu0 %v1220_v30 }
  0xfb   : > { %839 = vmax.xlane.f32.xlu2 %v838_v40  ;;  %1308 = vmatpush.bf16.msra.mxu1 %v1221_v32 }
  0xfd   : > { %v2209_v37 = vpop.f32.mrf.mxu2 }
  0xff   : > { %v2213_v41 = vpop.f32.mrf.mxu0 }
 0x100   : > { %v2211_v38 = vpop.f32.mrf.mxu3  ;;  %v2217_v44 = vpop.f32.mrf.mxu1 }
 0x101   : > { %v841_v42 = vmax.f32 %v2209_v37, %v2211_v38 }
 0x103   : > { %842 = vmax.xlane.f32.xlu2 %v841_v42 }
 0x105   : > { %v2219_v45 = vpop.f32.mrf.mxu2 }
 0x107   : > { %v2223_v29 = vpop.f32.mrf.mxu0 }
 0x108   : > { %v2221_v25 = vpop.f32.mrf.mxu3  ;;  %v2227_v30 = vpop.f32.mrf.mxu1 }
 0x109   : > { %v844_v26 = vmax.f32 %v2219_v45, %v2221_v25 }
 0x10b   : > { %845 = vmax.xlane.f32.xlu0 %v844_v26 }
 0x10d   : > { %v2229_v31 = vpop.f32.mrf.mxu2 }
 0x10e   : > { %2633 = vst [vmem:[#allocation5_spill] sm:$0xff] %v2229_v31 }
 0x10f   : > { %v2233_v46 = vpop.f32.mrf.mxu0 }
 0x110   : > { %v2231_v32 = vpop.f32.mrf.mxu3  ;;  %v2237_v48 = vpop.f32.mrf.mxu1 }
 0x111   : > { %2634 = vst [vmem:[#allocation6_spill] sm:$0xff] %v2231_v32  ;;  %v847_v47 = vmax.f32 %v2229_v31, %v2231_v32 }
 0x113   : > { %848 = vmax.xlane.f32.xlu1 %v847_v47 }
 0x115   : > { %v2239_v49 = vpop.f32.mrf.mxu2 }
 0x117   : > { %v2243_v51 = vpop.f32.mrf.mxu0 }
 0x118   : > { %v2241_v50 = vpop.f32.mrf.mxu3  ;;  %v2247_v53 = vpop.f32.mrf.mxu1 }
 0x119   : > { %2635 = vst [vmem:[#allocation7_spill] sm:$0xff] %v2241_v50  ;;  %v850_v52 = vmax.f32 %v2239_v49, %v2241_v50 }
 0x11b   : > { %851 = vmax.xlane.f32.xlu2 %v850_v52 }
 0x11d   : > { %v2249_v54 = vpop.f32.mrf.mxu2 }
 0x11e   : > { %2636 = vst [vmem:[#allocation8_spill] sm:$0xff] %v2249_v54 }
 0x11f   : > { %v2253_v56 = vpop.f32.mrf.mxu0 }
 0x120   : > { %v2251_v55 = vpop.f32.mrf.mxu3  ;;  %v2257_v58 = vpop.f32.mrf.mxu1 }
 0x121   : > { %2637 = vst [vmem:[#allocation9_spill] sm:$0xff] %v2251_v55  ;;  %v853_v57 = vmax.f32 %v2249_v54, %v2251_v55 }
 0x123   : > { %854 = vmax.xlane.f32.xlu0 %v853_v57 }
 0x125   : > { %v2259_v59 = vpop.f32.mrf.mxu2 }
 0x127   : > { %v2263_v61 = vpop.f32.mrf.mxu0 }
 0x128   : > { %v2261_v60 = vpop.f32.mrf.mxu3  ;;  %v2267_v63 = vpop.f32.mrf.mxu1 }
 0x129   : > { %v856_v62 = vmax.f32 %v2259_v59, %v2261_v60 }
 0x12b   : > { %857 = vmax.xlane.f32.xlu1 %v856_v62 }
 0x12d   : > { %v2269_v2 = vpop.f32.mrf.mxu2 }
 0x12f   : > { %v757_v4 = vpop.f32.mrf.mxu0 }
 0x130   : > { %v2271_v3 = vpop.f32.mrf.mxu3  ;;  %v806_v8 = vpop.f32.mrf.mxu1 }
 0x131   : > { %v859_v7 = vmax.f32 %v2269_v2, %v2271_v3 }
 0x133   : > { %860 = vmax.xlane.f32.xlu2 %v859_v7 }
 0x135   : > { %v2275_v9 = vpop.f32.mrf.mxu2 }
 0x137   : > { %v759_v13 = vpop.f32.mrf.mxu0 }
 0x138   : > { %v2277_v10 = vpop.f32.mrf.mxu3  ;;  %v1042_v15 = vpack.c.bf16 %v759_v13, %v757_v4  ;;  %v808_v16 = vpop.f32.mrf.mxu1 }
 0x139   : > { %v862_v14 = vmax.f32 %v2275_v9, %v2277_v10  ;;  %v1043_v17 = vpack.c.bf16 %v808_v16, %v806_v8 }
 0x13b   : > { %863 = vmax.xlane.f32.xlu0 %v862_v14 }
 0x13d   : > { %v2281_v18 = vpop.f32.mrf.mxu2 }
 0x13f   : > { %v762_v23 = vpop.f32.mrf.mxu0 }
 0x140   : > { %v2283_v19 = vpop.f32.mrf.mxu3  ;;  %v811_v28 = vpop.f32.mrf.mxu1 }
 0x141   : > { %v865_v24 = vmax.f32 %v2281_v18, %v2283_v19 }
 0x143   : > { %866 = vmax.xlane.f32.xlu1 %v865_v24 }
 0x145   : > { %v2287_v33 = vpop.f32.mrf.mxu2 }
 0x147   : > { %v764_v40 = vpop.f32.mrf.mxu0 }
 0x148   : > { %v2289_v34 = vpop.f32.mrf.mxu3  ;;  %v813_v26 = vpop.f32.mrf.mxu1 }
 0x149   : > { %v868_v42 = vmax.f32 %v2287_v33, %v2289_v34 }
 0x14b   : > { %869 = vmax.xlane.f32.xlu2 %v868_v42 }
 0x14d   : > { %v2293_v52 = vpop.f32.mrf.mxu2 }
 0x14e   : > { %v828_v47 = vpop.xlane.xlu0 %827  ;;  %2638 = vst [vmem:[#allocation10_spill] sm:$0xff] %v2293_v52 }
 0x14f   : > { %v767_v62 = vpop.f32.mrf.mxu0 }
 0x150   : > { %v2295_v57 = vpop.f32.mrf.mxu3 }
 0x151   : > { %2639 = vst [vmem:[#allocation11_spill] sm:$0xff] %v2295_v57  ;;  %v871_v4 = vmax.f32 %v2293_v52, %v2295_v57  ;;  %v816_v7 = vpop.f32.mrf.mxu1 }
 0x153   : > { %872 = vmax.xlane.f32.xlu0 %v871_v4 }
 0x156   : > { %v831_v8 = vpop.xlane.xlu0 %830 }
 0x157   : > { %v876_v13 = vsub.f32 %v2160_v5, %v831_v8  ;;  %v877_v14 = vsub.f32 %v2162_v6, %v831_v8  ;;  %v769_v55 = vpop.f32.mrf.mxu0 }
 0x158   : > { %v1046_v8 = vpack.c.bf16 %v769_v55, %v767_v62 }
 0x159   : > { %v910_v16 = vmul.f32 1.442695, %v876_v13  ;;  %v912_v24 = vmul.f32 1.442695, %v877_v14  ;;  %v818_v42 = vpop.f32.mrf.mxu1  ;;  %v1044_v14 = vpack.c.bf16 %v764_v40, %v762_v23  ;;  %v1038_v23 = vpack.c.bf16 %v2243_v51, %v2233_v46 }
 0x15a   : > { %v1047_v13 = vpack.c.bf16 %v818_v42, %v816_v7 }
 0x15b   : > { %1759 = vpow2.f32 %v910_v16  ;;  %v1045_v16 = vpack.c.bf16 %v813_v26, %v811_v28  ;;  %v1039_v28 = vpack.c.bf16 %v2247_v53, %v2237_v48 }
 0x15c   : > { %1761 = vpow2.f32 %v912_v24 }
 0x15e   : > { %v2309_v24 = vpop.xlane.xlu1 %833 }
 0x15f   : > { %v772_v32 = vpop.f32.mrf.mxu0 }
 0x161   : > { %v2301_v54 = vpop.eup %1759  ;;  %v821_v50 = vpop.f32.mrf.mxu1 }
 0x162   : > { %v2303_v31 = vpop.eup %1761 }
 0x163   : > { %v2307_v4 = vadd.f32 %v2303_v31, %v2301_v54 }
 0x165   : > { %2640 = vst [vmem:[#allocation12_spill] sm:$0xff] %v2307_v4  ;;  %v1040_v4 = vpack.c.bf16 %v2263_v61, %v2253_v56  ;;  %v874_v56 = vsub.f32 %v2154_v0, %v828_v47  ;;  %v875_v61 = vsub.f32 %v2156_v1, %v828_v47  ;;  %v1034_v1 = vpack.c.bf16 %v2197_v39, %v2181_v22 }
 0x166   : > { %v837_v55 = vpop.xlane.xlu1 %836 }
 0x167   : > { %v774_v57 = vpop.f32.mrf.mxu0  ;;  %v906_v46 = vmul.f32 1.442695, %v874_v56  ;;  %v908_v48 = vmul.f32 1.442695, %v875_v61 }
 0x168   : > { %v1048_v5 = vpack.c.bf16 %v774_v57, %v772_v32  ;;  %v1041_v32 = vpack.c.bf16 %v2267_v63, %v2257_v58  ;;  %v1036_v58 = vpack.c.bf16 %v2223_v29, %v2213_v41  ;;  %v1037_v63 = vpack.c.bf16 %v2227_v30, %v2217_v44 }
 0x169   : > { %v823_v52 = vpop.f32.mrf.mxu1  ;;  %1763 = vpow2.f32 %v906_v46  ;;  %v1035_v44 = vpack.c.bf16 %v2201_v43, %v2186_v27  ;;  %v878_v27 = vsub.f32 %v2171_v11, %v2309_v24  ;;  %v881_v43 = vsub.f32 %v2179_v21, %v837_v55 }
 0x16a   : > { %v1049_v6 = vpack.c.bf16 %v823_v52, %v821_v50  ;;  %1050 = vmatpush.bf16.xpose.msra.mxu2 %v1048_v5  ;;  %1765 = vpow2.f32 %v908_v48 }
 0x16b   : > { %v914_v21 = vmul.f32 1.442695, %v878_v27  ;;  %v920_v5 = vmul.f32 1.442695, %v881_v43 }
 0x16c   : > { %1099 = vmatpush.bf16.xpose.msra.mxu3 %v1049_v6 }
 0x16e   : > { %v2315_v50 = vpop.xlane.xlu2 %839 }
 0x16f   : > { %v882_v48 = vsub.f32 %v2193_v35, %v2315_v50 }
 0x172   : > { %1051 = vmatpush.bf16.xpose.msra.mxu2 %v1046_v8 }
 0x174   : > { %1100 = vmatpush.bf16.xpose.msra.mxu3 %v1047_v13 }
 0x17a   : > { %1052 = vmatpush.bf16.xpose.msra.mxu2 %v1044_v14 }
 0x17c   : > { %1101 = vmatpush.bf16.xpose.msra.mxu3 %v1045_v16 }
 0x17e   : > { %v2331_v51 = vpop.xlane.xlu0 %845 }
 0x17f   : > { %v886_v13 = vsub.f32 %v2219_v45, %v2331_v51 }
 0x182   : > { %1053 = vmatpush.bf16.xpose.msra.mxu2 %v1042_v15  ;;  %v2321_v15 = vpop.xlane.xlu2 %842 }
 0x183   : > { %v884_v61 = vsub.f32 %v2209_v37, %v2321_v15 }
 0x184   : > { %1102 = vmatpush.bf16.xpose.msra.mxu3 %v1043_v17 }
 0x186   : > { %v2323_v17 = vpop.xlane.xlu1 %848 }
 0x18a   : > { %1054 = vmatpush.bf16.xpose.msra.mxu2 %v1040_v4 }
 0x18c   : > { %1103 = vmatpush.bf16.xpose.msra.mxu3 %v1041_v32  ;;  %v887_v32 = vsub.f32 %v2221_v25, %v2331_v51 }
 0x18e   : > { %v2333_v53 = vpop.xlane.xlu2 %851  ;;  %v932_v56 = vmul.f32 1.442695, %v887_v32 }
 0x18f   : > { %v890_v27 = vsub.f32 %v2239_v49, %v2333_v53 }
 0x192   : > { %1055 = vmatpush.bf16.xpose.msra.mxu2 %v1038_v23  ;;  %v930_v23 = vmul.f32 1.442695, %v886_v13 }
 0x194   : > { %1104 = vmatpush.bf16.xpose.msra.mxu3 %v1039_v28 }
 0x196   : > { %v2341_v30 = vpop.xlane.xlu0 %854 }
 0x19a   : > { %1056 = vmatpush.bf16.xpose.msra.mxu2 %v1036_v58 }
 0x19c   : > { %1105 = vmatpush.bf16.xpose.msra.mxu3 %v1037_v63 }
 0x19e   : > { %v858_v40 = vpop.xlane.xlu1 %857 }
 0x19f   : > { %v894_v26 = vsub.f32 %v2259_v59, %v858_v40  ;;  %v895_v0 = vsub.f32 %v2261_v60, %v858_v40  ;;  %v2343_v59 = vpop.eup %1763  ;;  %v880_v60 = vsub.f32 %v2177_v20, %v837_v55  ;;  %v879_v20 = vsub.f32 %v2173_v12, %v2309_v24 }
 0x1a0   : > { %v2348_v22 = vpop.eup %1765  ;;  %v1018_v42 = vpack.c.bf16 %v2301_v54, %v2343_v59 }
 0x1a1   : > { %v946_v41 = vmul.f32 1.442695, %v894_v26  ;;  %v948_v29 = vmul.f32 1.442695, %v895_v0  ;;  %v916_v54 = vmul.f32 1.442695, %v879_v20  ;;  %v885_v0 = vsub.f32 %v2211_v38, %v2321_v15 }
 0x1a2   : > { %1057 = vmatpush.bf16.xpose.msra.mxu2 %v1034_v1 }
 0x1a3   : > { %1767 = vpow2.f32 %v946_v41  ;;  %v928_v38 = vmul.f32 1.442695, %v885_v0 }
 0x1a4   : > { %1769 = vpow2.f32 %v948_v29  ;;  %1106 = vmatpush.bf16.xpose.msra.mxu3 %v1035_v44  ;;  %v922_v44 = vmul.f32 1.442695, %v882_v48  ;;  %v2646_v48 = vld [vmem:[#allocation8_spill] sm:$0xff] }
 0x1a6   : > { %v861_v47 = vpop.xlane.xlu2 %860 }
 0x1a7   : > { %v896_v52 = vsub.f32 %v2269_v2, %v861_v47  ;;  %v897_v57 = vsub.f32 %v2271_v3, %v861_v47  ;;  %v1019_v2 = vpack.c.bf16 %v2303_v31, %v2348_v22  ;;  %v918_v3 = vmul.f32 1.442695, %v880_v60 }
 0x1a9   : > { %v2352_v39 = vpop.eup %1767  ;;  %v950_v62 = vmul.f32 1.442695, %v896_v52  ;;  %v952_v7 = vmul.f32 1.442695, %v897_v57  ;;  %1058 = vmatmul.bf16.vlgmr.msra.gmra.mxu2 %v1018_v42  ;;  %v2641_v42 = vld [vmem:[#allocation7_spill] sm:$0xff] }
 0x1aa   : > { %v2357_v4 = vpop.eup %1769  ;;  %v891_v20 = vsub.f32 %v2641_v42, %v2333_v53 }
 0x1ab   : > { %1771 = vpow2.f32 %v950_v62  ;;  %v1000_v11 = vadd.f32 %v2357_v4, %v2352_v39  ;;  %1107 = vmatmul.bf16.vlgmr.msra.gmra.mxu3 %v1019_v2 }
 0x1ac   : > { %1773 = vpow2.f32 %v952_v7  ;;  %v940_v53 = vmul.f32 1.442695, %v891_v20 }
 0x1ad   : > { %1001 = vadd.xlane.f32.xlu2 %v1000_v11  ;;  %1775 = vpow2.f32 %v918_v3  ;;  %v938_v11 = vmul.f32 1.442695, %v890_v27 }
 0x1ae   : > { %v864_v6 = vpop.xlane.xlu0 %863  ;;  %1777 = vpow2.f32 %v914_v21 }
 0x1af   : > { %v898_v8 = vsub.f32 %v2275_v9, %v864_v6  ;;  %v899_v12 = vsub.f32 %v2277_v10, %v864_v6  ;;  %1779 = vpow2.f32 %v920_v5  ;;  %v2642_v6 = vld [vmem:[#allocation10_spill] sm:$0xff] }
 0x1b0   : > { %1781 = vpow2.f32 %v916_v54 }
 0x1b1   : > { %v2367_v31 = vpop.eup %1771  ;;  %v954_v14 = vmul.f32 1.442695, %v898_v8  ;;  %v956_v16 = vmul.f32 1.442695, %v899_v12  ;;  %v2643_v12 = vld [vmem:[#allocation11_spill] sm:$0xff] }
 0x1b2   : > { %v2371_v24 = vpop.eup %1773  ;;  %v1028_v9 = vpack.c.bf16 %v2367_v31, %v2352_v39 }
 0x1b3   : > { %1783 = vpow2.f32 %v954_v14  ;;  %v1003_v10 = vadd.f32 %v2371_v24, %v2367_v31  ;;  %v1029_v55 = vpack.c.bf16 %v2371_v24, %v2357_v4  ;;  %v2381_v45 = vpop.eup %1775 }
 0x1b4   : > { %1785 = vpow2.f32 %v956_v16  ;;  %v2383_v28 = vpop.eup %1777  ;;  %v2644_v16 = vld [vmem:[#allocation5_spill] sm:$0xff] }
 0x1b5   : > { %1004 = vadd.xlane.f32.xlu0 %v1003_v10  ;;  %v2385_v25 = vpop.eup %1779  ;;  %v1020_v40 = vpack.c.bf16 %v2381_v45, %v2383_v28  ;;  %1787 = vpow2.f32 %v930_v23  ;;  %v888_v32 = vsub.f32 %v2644_v16, %v2323_v17 }
 0x1b6   : > { %v867_v58 = vpop.xlane.xlu1 %866  ;;  %v2391_v51 = vpop.eup %1781  ;;  %1789 = vpow2.f32 %v932_v56  ;;  %v2645_v56 = vld [vmem:[#allocation6_spill] sm:$0xff] }
 0x1b7   : > { %v900_v63 = vsub.f32 %v2281_v18, %v867_v58  ;;  %v901_v46 = vsub.f32 %v2283_v19, %v867_v58  ;;  %v883_v18 = vsub.f32 %v2195_v36, %v2315_v50  ;;  %v1021_v35 = vpack.c.bf16 %v2385_v25, %v2391_v51 }
 0x1b8   : > { %v926_v19 = vmul.f32 1.442695, %v884_v61  ;;  %v889_v58 = vsub.f32 %v2645_v56, %v2323_v17 }
 0x1b9   : > { %v2397_v26 = vpop.eup %1783  ;;  %v958_v41 = vmul.f32 1.442695, %v900_v63  ;;  %v960_v37 = vmul.f32 1.442695, %v901_v46  ;;  %1063 = vmatmul.bf16.gmra.mxu2 %v1020_v40  ;;  %v924_v15 = vmul.f32 1.442695, %v883_v18  ;;  %v892_v40 = vsub.f32 %v2646_v48, %v2341_v30 }
 0x1ba   : > { %v2401_v29 = vpop.eup %1785  ;;  %v936_v17 = vmul.f32 1.442695, %v889_v58 }
 0x1bb   : > { %1791 = vpow2.f32 %v958_v41  ;;  %v1006_v1 = vadd.f32 %v2401_v29, %v2397_v26  ;;  %1112 = vmatmul.bf16.gmra.mxu3 %v1021_v35  ;;  %v2409_v60 = vpop.eup %1787  ;;  %v2647_v41 = vld [vmem:[#allocation9_spill] sm:$0xff] }
 0x1bc   : > { %1793 = vpow2.f32 %v960_v37  ;;  %v2413_v52 = vpop.eup %1789  ;;  %v893_v37 = vsub.f32 %v2647_v41, %v2341_v30  ;;  %v970_v30 = vadd.f32 %v2348_v22, %v2343_v59  ;;  %v976_v22 = vadd.f32 %v2391_v51, %v2383_v28  ;;  %v1153_v41 = vld [vmem:[%s2622_s6 + $0x28] sm:$0xff] }
 0x1bd   : > { %1007 = vadd.xlane.f32.xlu0 %v1006_v1  ;;  %1795 = vpow2.f32 %v926_v19  ;;  %v988_v2 = vadd.f32 %v2413_v52, %v2409_v60  ;;  %v934_v19 = vmul.f32 1.442695, %v888_v32  ;;  %v942_v1 = vmul.f32 1.442695, %v892_v40 }
 0x1be   : > { %v870_v47 = vpop.xlane.xlu2 %869  ;;  %1797 = vpow2.f32 %v922_v44 }
 0x1bf   : > { %v902_v36 = vsub.f32 %v2287_v33, %v870_v47  ;;  %v903_v50 = vsub.f32 %v2289_v34, %v870_v47  ;;  %1799 = vpow2.f32 %v928_v38  ;;  %v944_v38 = vmul.f32 1.442695, %v893_v37 }
 0x1c0   : > { %1801 = vpow2.f32 %v924_v15 }
 0x1c1   : > { %v2415_v57 = vpop.eup %1791  ;;  %v962_v43 = vmul.f32 1.442695, %v902_v36  ;;  %v964_v62 = vmul.f32 1.442695, %v903_v50 }
 0x1c2   : > { %v2419_v7 = vpop.eup %1793  ;;  %v1030_v33 = vpack.c.bf16 %v2415_v57, %v2397_v26 }
 0x1c3   : > { %1803 = vpow2.f32 %v962_v43  ;;  %v1009_v34 = vadd.f32 %v2419_v7, %v2415_v57  ;;  %v1031_v49 = vpack.c.bf16 %v2419_v7, %v2401_v29  ;;  %v1796_v3 = vpop.eup %1795 }
 0x1c4   : > { %1805 = vpow2.f32 %v964_v62  ;;  %v1798_v21 = vpop.eup %1797 }
 0x1c5   : > { %1010 = vadd.xlane.f32.xlu1 %v1009_v34  ;;  %989 = vadd.xlane.f32.xlu0 %v988_v2  ;;  %v1800_v54 = vpop.eup %1799  ;;  %v1022_v10 = vpack.c.bf16 %v1796_v3, %v1798_v21  ;;  %1807 = vpow2.f32 %v938_v11 }
 0x1c6   : > { %v873_v5 = vpop.xlane.xlu0 %872  ;;  %v1802_v14 = vpop.eup %1801  ;;  %1809 = vpow2.f32 %v940_v53  ;;  %v985_v35 = vadd.f32 %v1800_v54, %v1796_v3 }
 0x1c7   : > { %v904_v8 = vsub.f32 %v2642_v6, %v873_v5  ;;  %v905_v13 = vsub.f32 %v2643_v12, %v873_v5  ;;  %v1023_v0 = vpack.c.bf16 %v1800_v54, %v1802_v14  ;;  %v982_v5 = vadd.f32 %v1802_v14, %v1798_v21 }
 0x1c9   : > { %v2435_v23 = vpop.eup %1803  ;;  %v966_v61 = vmul.f32 1.442695, %v904_v8  ;;  %v968_v63 = vmul.f32 1.442695, %v905_v13  ;;  %1068 = vmatmul.bf16.gmra.mxu2 %v1022_v10 }
 0x1ca   : > { %v1806_v46 = vpop.eup %1805 }
 0x1cb   : > { %1811 = vpow2.f32 %v966_v61  ;;  %v1012_v18 = vadd.f32 %v1806_v46, %v2435_v23  ;;  %1117 = vmatmul.bf16.gmra.mxu3 %v1023_v0  ;;  %v1808_v44 = vpop.eup %1807 }
 0x1cc   : > { %1813 = vpow2.f32 %v968_v63  ;;  %v1810_v15 = vpop.eup %1809 }
 0x1cd   : > { %1013 = vadd.xlane.f32.xlu1 %v1012_v18  ;;  %986 = vadd.xlane.f32.xlu0 %v985_v35  ;;  %1815 = vpow2.f32 %v934_v19  ;;  %v994_v27 = vadd.f32 %v1810_v15, %v1808_v44  ;;  %v1152_v18 = vld [vmem:[%s2622_s6 + $0x20] sm:$0xff] }
 0x1ce   : > { %1817 = vpow2.f32 %v936_v17 }
 0x1cf   : > { %1819 = vpow2.f32 %v942_v1 }
 0x1d0   : > { %1821 = vpow2.f32 %v944_v38 }
 0x1d1   : > { %v1812_v47 = vpop.eup %1811 }
 0x1d2   : > { %v1814_v36 = vpop.eup %1813  ;;  %v1032_v50 = vpack.c.bf16 %v1812_v47, %v2435_v23 }
 0x1d3   : > { %v1015_v43 = vadd.f32 %v1814_v36, %v1812_v47  ;;  %v1033_v62 = vpack.c.bf16 %v1814_v36, %v1806_v46  ;;  %v1816_v42 = vpop.eup %1815 }
 0x1d4   : > { %v1818_v20 = vpop.eup %1817  ;;  %v1024_v3 = vpack.c.bf16 %v1816_v42, %v2409_v60  ;;  %v979_v60 = vadd.f32 %v2385_v25, %v2381_v45 }
 0x1d5   : > { %995 = vadd.xlane.f32.xlu1 %v994_v27  ;;  %971 = vadd.xlane.f32.xlu0 %v970_v30  ;;  %v1820_v34 = vpop.eup %1819  ;;  %v1025_v11 = vpack.c.bf16 %v1818_v20, %v2413_v52  ;;  %v991_v53 = vadd.f32 %v1818_v20, %v1816_v42  ;;  %v2648_v52 = vld [vmem:[#allocation12_spill] sm:$0xff]  ;;  %v1148_v27 = vld [vmem:[%s2622_s6] sm:$0xff]  ;;  %v1154_v20 = vld [vmem:[%s2622_s6 + $0x30] sm:$0xff] }
 0x1d6   : > { %1016 = vadd.xlane.f32.xlu2 %v1015_v43  ;;  %v1822_v2 = vpop.eup %1821  ;;  %v1026_v54 = vpack.c.bf16 %v1820_v34, %v1808_v44 }
 0x1d7   : > { %v997_v59 = vadd.f32 %v1822_v2, %v1820_v34  ;;  %v1027_v6 = vpack.c.bf16 %v1822_v2, %v1810_v15  ;;  %v1155_v34 = vld [vmem:[%s2622_s6 + $0x38] sm:$0xff] }
 0x1d9   : > { %1073 = vmatmul.bf16.gmra.mxu2 %v1024_v3  ;;  %v1149_v3 = vld [vmem:[%s2622_s6 + $0x8] sm:$0xff] }
 0x1db   : > { %1122 = vmatmul.bf16.gmra.mxu3 %v1025_v11 }
 0x1dd   : > { %992 = vadd.xlane.f32.xlu1 %v991_v53  ;;  %v1151_v53 = vld [vmem:[%s2622_s6 + $0x18] sm:$0xff] }
 0x1de   : > { %998 = vadd.xlane.f32.xlu2 %v997_v59 }
 0x1e5   : > { %977 = vadd.xlane.f32.xlu1 %v976_v22 }
 0x1e6   : > { %983 = vadd.xlane.f32.xlu2 %v982_v5 }
 0x1e9   : > { %1078 = vmatmul.bf16.gmra.mxu2 %v1026_v54 }
 0x1eb   : > { %1127 = vmatmul.bf16.gmra.mxu3 %v1027_v6 }
 0x1ed   : > { %974 = vadd.xlane.f32.xlu1 %v2648_v52 }
 0x1ee   : > { %980 = vadd.xlane.f32.xlu2 %v979_v60 }
 0x1f9   : > { %1083 = vmatmul.bf16.gmra.mxu2 %v1028_v9 }
 0x1fb   : > { %1132 = vmatmul.bf16.gmra.mxu3 %v1029_v55 }
 0x209   : > { %1088 = vmatmul.bf16.gmra.mxu2 %v1030_v33 }
 0x20b   : > { %1137 = vmatmul.bf16.gmra.mxu3 %v1031_v49 }
 0x219   : > { %1093 = vmatmul.bf16.gmra.mxu2 %v1032_v50 }
 0x21b   : > { %1142 = vmatmul.bf16.gmra.mxu3 %v1033_v62  ;;  %v1150_v62 = vld [vmem:[%s2622_s6 + $0x10] sm:$0xff] }
 0x220   : > { %v2480_v7 = vpop.xlane.xlu2 %1001 }
 0x228   : > { %v2468_v39 = vpop.xlane.xlu0 %1004 }
 0x22c   : > { %v1059_v45 = vpop.f32.mrf.mxu2 }
 0x22e   : > { %v1108_v28 = vpop.f32.mrf.mxu3 }
 0x22f   : > { %v2466_v25 = vadd.f32 %v1108_v28, %v1059_v45 }
 0x230   : > { %v2474_v55 = vpop.xlane.xlu0 %1007 }
 0x234   : > { %v1061_v31 = vpop.f32.mrf.mxu2 }
 0x236   : > { %v1110_v9 = vpop.f32.mrf.mxu3 }
 0x237   : > { %v2472_v24 = vadd.f32 %v1110_v9, %v1061_v31 }
 0x238   : > { %v2470_v4 = vpop.xlane.xlu1 %1010  ;;  %v990_v33 = vpop.xlane.xlu0 %989 }
 0x23c   : > { %v1064_v51 = vpop.f32.mrf.mxu2 }
 0x23e   : > { %v1113_v26 = vpop.f32.mrf.mxu3 }
 0x23f   : > { %v2478_v57 = vadd.f32 %v1113_v26, %v1064_v51 }
 0x240   : > { %v2476_v29 = vpop.xlane.xlu1 %1013  ;;  %v987_v32 = vpop.xlane.xlu0 %986 }
 0x241   : > { %1823 = vrcp.f32 %v987_v32 }
 0x244   : > { %v1066_v49 = vpop.f32.mrf.mxu2 }
 0x246   : > { %v1115_v21 = vpop.f32.mrf.mxu3 }
 0x247   : > { %v1116_v12 = vadd.f32 %v1115_v21, %v1066_v49  ;;  %v1824_v0 = vpop.eup %1823 }
 0x248   : > { %v2482_v8 = vpop.xlane.xlu1 %995  ;;  %v972_v40 = vpop.xlane.xlu0 %971  ;;  %v1185_v44 = vmul.f32 %v1824_v0, %v1153_v41 }
 0x249   : > { %v2484_v13 = vpop.xlane.xlu2 %1016 }
 0x24c   : > { %v1069_v14 = vpop.f32.mrf.mxu2 }
 0x24e   : > { %v1118_v16 = vpop.f32.mrf.mxu3 }
 0x24f   : > { %v1119_v23 = vadd.f32 %v1118_v16, %v1069_v14 }
 0x250   : > { %v993_v10 = vpop.xlane.xlu1 %992 }
 0x251   : > { %v2486_v56 = vpop.xlane.xlu2 %998 }
 0x254   : > { %v1071_v58 = vpop.f32.mrf.mxu2 }
 0x256   : > { %v1120_v61 = vpop.f32.mrf.mxu3 }
 0x257   : > { %v1121_v46 = vadd.f32 %v1120_v61, %v1071_v58 }
 0x258   : > { %v978_v63 = vpop.xlane.xlu1 %977 }
 0x259   : > { %v984_v48 = vpop.xlane.xlu2 %983  ;;  %v1201_v30 = vmul.f32 %v1185_v44, %v1121_v46 }
 0x25a   : > { %1825 = vrcp.f32 %v984_v48 }
 0x25b   : > { %1827 = vrcp.f32 %v990_v33 }
 0x25c   : > { %1829 = vrcp.f32 %v972_v40  ;;  %v1074_v37 = vpop.f32.mrf.mxu2 }
 0x25d   : > { %1831 = vrcp.f32 %v978_v63 }
 0x25e   : > { %1833 = vrcp.f32 %v993_v10  ;;  %v1123_v35 = vpop.f32.mrf.mxu3 }
 0x25f   : > { %v1124_v1 = vadd.f32 %v1123_v35, %v1074_v37 }
 0x260   : > { %v1826_v19 = vpop.eup %1825  ;;  %v975_v17 = vpop.xlane.xlu1 %974 }
 0x261   : > { %1835 = vrcp.f32 %v975_v17  ;;  %v981_v38 = vpop.xlane.xlu2 %980  ;;  %v1184_v15 = vmul.f32 %v1826_v19, %v1152_v18  ;;  %v1828_v47 = vpop.eup %1827  ;;  %v1162_v19 = vld [vmem:[%s2622_s6 + $0x70] sm:$0xff] }
 0x262   : > { %1837 = vrcp.f32 %v981_v38  ;;  %v1830_v36 = vpop.eup %1829  ;;  %v1186_v60 = vmul.f32 %v1828_v47, %v1154_v20 }
 0x263   : > { %v1200_v50 = vmul.f32 %v1184_v15, %v1119_v23  ;;  %v1832_v43 = vpop.eup %1831  ;;  %v1180_v59 = vmul.f32 %v1830_v36, %v1148_v27  ;;  %1839 = vrcp.f32 %v2476_v29  ;;  %v1163_v29 = vld [vmem:[%s2622_s6 + $0x78] sm:$0xff]  ;;  %v1160_v36 = vld [vmem:[%s2622_s6 + $0x60] sm:$0xff] }
 0x264   : > { %v1834_v42 = vpop.eup %1833  ;;  %v1076_v11 = vpop.f32.mrf.mxu2  ;;  %v1182_v54 = vmul.f32 %v1832_v43, %v1150_v62  ;;  %v1202_v9 = vmul.f32 %v1186_v60, %v1124_v1  ;;  %1841 = vrcp.f32 %v2484_v13  ;;  %v1159_v62 = vld [vmem:[%s2622_s6 + $0x58] sm:$0xff] }
 0x265   : > { %v2506_v2 = vpack.c.bf16 %v1201_v30, %v1200_v50  ;;  %v1187_v45 = vmul.f32 %v1834_v42, %v1155_v34  ;;  %v1196_v26 = vmul.f32 %v1180_v59, %v2466_v25  ;;  %1843 = vrcp.f32 %v2470_v4  ;;  %v1161_v4 = vld [vmem:[%s2622_s6 + $0x68] sm:$0xff] }
 0x266   : > { %v1125_v5 = vpop.f32.mrf.mxu3  ;;  %v1198_v49 = vmul.f32 %v1182_v54, %v2478_v57  ;;  %1845 = vrcp.f32 %v2474_v55 }
 0x267   : > { %v1836_v22 = vpop.eup %1835  ;;  %v1126_v52 = vadd.f32 %v1125_v5, %v1076_v11  ;;  %1847 = vrcp.f32 %v2468_v39  ;;  %v1158_v11 = vld [vmem:[%s2622_s6 + $0x50] sm:$0xff] }
 0x268   : > { %v1838_v6 = vpop.eup %1837  ;;  %v1181_v28 = vmul.f32 %v1836_v22, %v1149_v3  ;;  %1849 = vrcp.f32 %v2480_v7 }
 0x269   : > { %v1183_v31 = vmul.f32 %v1838_v6, %v1151_v53  ;;  %v1203_v51 = vmul.f32 %v1187_v45, %v1126_v52  ;;  %v1840_v18 = vpop.eup %1839  ;;  %1851 = vrcp.f32 %v2486_v56 }
 0x26a   : > { %v1197_v33 = vmul.f32 %v1181_v28, %v2472_v24  ;;  %v1842_v35 = vpop.eup %1841  ;;  %v1194_v39 = vmul.f32 %v1840_v18, %v1162_v19  ;;  %1853 = vrcp.f32 %v2482_v8  ;;  %v1157_v8 = vld [vmem:[%s2622_s6 + $0x48] sm:$0xff]  ;;  %v1156_v28 = vld [vmem:[%s2622_s6 + $0x40] sm:$0xff] }
 0x26b   : > { %v1199_v21 = vmul.f32 %v1183_v31, %v1116_v12  ;;  %v2517_v14 = vpack.c.bf16 %v1203_v51, %v1202_v9  ;;  %v1844_v13 = vpop.eup %1843  ;;  %v1195_v15 = vmul.f32 %v1842_v35, %v1163_v29 }
 0x26c   : > { %v2519_v16 = vpack.c.bf16 %v1197_v33, %v1196_v26  ;;  %v1079_v10 = vpop.f32.mrf.mxu2  ;;  %v1846_v47 = vpop.eup %1845  ;;  %v1193_v50 = vmul.f32 %v1844_v13, %v1161_v4 }
 0x26d   : > { %v2521_v32 = vpack.c.bf16 %v1199_v21, %v1198_v49  ;;  %v1848_v43 = vpop.eup %1847  ;;  %v1192_v20 = vmul.f32 %v1846_v47, %v1160_v36 }
 0x26e   : > { %v1128_v23 = vpop.f32.mrf.mxu3  ;;  %v1850_v56 = vpop.eup %1849  ;;  %v1191_v59 = vmul.f32 %v1848_v43, %v1159_v62 }
 0x26f   : > { %v2523_v58 = vadd.f32 %v1128_v23, %v1079_v10  ;;  %v1852_v5 = vpop.eup %1851  ;;  %v1190_v6 = vmul.f32 %v1850_v56, %v1158_v11 }
 0x270   : > { %v1854_v45 = vpop.eup %1853  ;;  %v1189_v31 = vmul.f32 %v1852_v5, %v1157_v8  ;;  %v1350_v8 = vld [vmem:[%s2620_s4] sm:$0xf] }
 0x271   : > { %v1188_v51 = vmul.f32 %v1854_v45, %v1156_v28 }
 0x273   : > { %v1204_v49 = vmul.f32 %v1188_v51, %v2523_v58 }
 0x274   : > { %v1081_v61 = vpop.f32.mrf.mxu2 }
 0x276   : > { %v1130_v63 = vpop.f32.mrf.mxu3 }
 0x277   : > { %v1131_v54 = vadd.f32 %v1130_v63, %v1081_v61 }
 0x279   : > { %v1205_v26 = vmul.f32 %v1189_v31, %v1131_v54 }
 0x27b   : > { %v1216_v21 = vpack.c.bf16 %v1205_v26, %v1204_v49 }
 0x27c   : > { %v1084_v46 = vpop.f32.mrf.mxu2 }
 0x27e   : > { %v1133_v48 = vpop.f32.mrf.mxu3 }
 0x27f   : > { %v1134_v53 = vadd.f32 %v1133_v48, %v1084_v46 }
 0x281   : > { %v1206_v9 = vmul.f32 %v1190_v6, %v1134_v53 }
 0x284   : > { %v1086_v25 = vpop.f32.mrf.mxu2 }
 0x286   : > { %v1135_v40 = vpop.f32.mrf.mxu3 }
 0x287   : > { %v1136_v42 = vadd.f32 %v1135_v40, %v1086_v25 }
 0x289   : > { %v1207_v60 = vmul.f32 %v1191_v59, %v1136_v42 }
 0x28b   : > { %v1217_v33 = vpack.c.bf16 %v1207_v60, %v1206_v9 }
 0x28c   : > { %v1089_v24 = vpop.f32.mrf.mxu2 }
 0x28e   : > { %v1138_v0 = vpop.f32.mrf.mxu3 }
 0x28f   : > { %v1139_v30 = vadd.f32 %v1138_v0, %v1089_v24 }
 0x291   : > { %v1208_v22 = vmul.f32 %v1192_v20, %v1139_v30 }
 0x294   : > { %v1091_v57 = vpop.f32.mrf.mxu2 }
 0x296   : > { %v1140_v12 = vpop.f32.mrf.mxu3 }
 0x297   : > { %v1141_v44 = vadd.f32 %v1140_v12, %v1091_v57 }
 0x299   : > { %v1209_v34 = vmul.f32 %v1193_v50, %v1141_v44 }
 0x29b   : > { %v1218_v52 = vpack.c.bf16 %v1209_v34, %v1208_v22  ;;  %v1367_v34 = vld [vmem:[%s2621_s5] sm:$0xff] }
 0x29c   : > { %v1094_v41 = vpop.f32.mrf.mxu2 }
 0x29e   : > { %v1143_v37 = vpop.f32.mrf.mxu3 }
 0x29f   : > { %v1144_v17 = vadd.f32 %v1143_v37, %v1094_v41 }
 0x2a1   : > { %v1210_v27 = vmul.f32 %v1194_v39, %v1144_v17 }
 0x2a4   : > { %v1096_v1 = vpop.f32.mrf.mxu2 }
 0x2a6   : > { %v1145_v55 = vpop.f32.mrf.mxu3 }
 0x2a7   : > { %v1146_v38 = vadd.f32 %v1145_v55, %v1096_v1 }
 0x2a9   : > { %v1211_v7 = vmul.f32 %v1195_v15, %v1146_v38 }
 0x2ab   : > { %v1219_v3 = vpack.c.bf16 %v1211_v7, %v1210_v27 }
 0x2ad   : > { %1664 = vmatpush.lsf.bf16.msrb.mxu0 %v1219_v3  ;;  %1692 = vmatpush.lsf.bf16.msrb.mxu1 %v1219_v3  ;;  %v1919_v3 = vmov 0  }
 0x2ae   : > { %1757 = vset.pattern.permute.xlu2 %v1919_v3  ;;  %1758 = vset.pattern.permute.xlu0 %v1919_v3 }
 0x2af   : > { %1370 = vperm.xlu2 %1757, %v1367_v34  }
 0x2b1   : > { %1665 = vmatpush.lsf.bf16.msrb.mxu0 %v1218_v52  ;;  %1693 = vmatpush.lsf.bf16.msrb.mxu1 %v1218_v52 }
 0x2b5   : > { %1666 = vmatpush.lsf.bf16.msrb.mxu0 %v1217_v33  ;;  %1694 = vmatpush.lsf.bf16.msrb.mxu1 %v1217_v33 }
 0x2b9   : > { %1667 = vmatpush.lsf.bf16.msrb.mxu0 %v1216_v21  ;;  %1695 = vmatpush.lsf.bf16.msrb.mxu1 %v1216_v21 }
 0x2bd   : > { %1668 = vmatpush.lsf.bf16.msrb.mxu0 %v2517_v14  ;;  %1696 = vmatpush.lsf.bf16.msrb.mxu1 %v2517_v14 }
 0x2c1   : > { %1669 = vmatpush.lsf.bf16.msrb.mxu0 %v2506_v2  ;;  %1697 = vmatpush.lsf.bf16.msrb.mxu1 %v2506_v2 }
 0x2c5   : > { %1670 = vmatpush.lsf.bf16.msrb.mxu0 %v2521_v32  ;;  %1698 = vmatpush.lsf.bf16.msrb.mxu1 %v2521_v32 }
 0x2c9   : > { %1671 = vmatpush.lsf.bf16.msrb.mxu0 %v2519_v16  ;;  %1699 = vmatpush.lsf.bf16.msrb.mxu1 %v2519_v16 }
 0x2cb   : > { %1672 = vllmr.16.mxu0  ;;  %1700 = vllmr.16.mxu1 }
 0x2ec   : > { %1673 = vmatmul.lmr.bf16.vlgmr.msra.gmra.16.mxu0  ;;  %1701 = vmatmul.lmr.bf16.vlgmr.msra.gmra.16.mxu1 }
 0x2f4   : > { %1674 = vmatmul.lmr.bf16.gmra.16.mxu0  ;;  %1702 = vmatmul.lmr.bf16.gmra.16.mxu1 }
 0x2fc   : > { %1675 = vmatmul.lmr.bf16.gmra.16.mxu0  ;;  %1703 = vmatmul.lmr.bf16.gmra.16.mxu1 }
 0x304   : > { %1676 = vmatmul.lmr.bf16.gmra.16.mxu0  ;;  %1704 = vmatmul.lmr.bf16.gmra.16.mxu1 }
 0x309   : > { %v1371_v54 = vpop.permute.xlu2 %1370 }
 0x30c   : > { %1677 = vmatmul.lmr.bf16.gmra.16.mxu0  ;;  %1705 = vmatmul.lmr.bf16.gmra.16.mxu1 }
 0x314   : > { %1678 = vmatmul.lmr.bf16.gmra.16.mxu0  ;;  %1706 = vmatmul.lmr.bf16.gmra.16.mxu1 }
 0x31c   : > { %1679 = vmatmul.lmr.bf16.gmra.16.mxu0  ;;  %1707 = vmatmul.lmr.bf16.gmra.16.mxu1 }
 0x324   : > { %1680 = vmatmul.lmr.bf16.gmra.16.mxu0  ;;  %1708 = vmatmul.lmr.bf16.gmra.16.mxu1 }
 0x32c   : > { %1681 = vmatmul.lmr.bf16.gmra.16.mxu0  ;;  %1709 = vmatmul.lmr.bf16.gmra.16.mxu1 }
 0x334   : > { %1682 = vmatmul.lmr.bf16.gmra.16.mxu0  ;;  %1710 = vmatmul.lmr.bf16.gmra.16.mxu1 }
 0x33c   : > { %1683 = vmatmul.lmr.bf16.gmra.16.mxu0  ;;  %1711 = vmatmul.lmr.bf16.gmra.16.mxu1 }
 0x344   : > { %1684 = vmatmul.lmr.bf16.gmra.16.mxu0  ;;  %1712 = vmatmul.lmr.bf16.gmra.16.mxu1 }
 0x34c   : > { %1685 = vmatmul.lmr.bf16.gmra.16.mxu0  ;;  %1713 = vmatmul.lmr.bf16.gmra.16.mxu1 }
 0x354   : > { %1686 = vmatmul.lmr.bf16.gmra.16.mxu0  ;;  %1714 = vmatmul.lmr.bf16.gmra.16.mxu1 }
 0x35c   : > { %1687 = vmatmul.lmr.bf16.gmra.16.mxu0  ;;  %1715 = vmatmul.lmr.bf16.gmra.16.mxu1 }
 0x364   : > { %1688 = vmatmul.lmr.bf16.gmra.16.mxu0  ;;  %1716 = vmatmul.lmr.bf16.gmra.16.mxu1 }
 0x369   : > { %v2566_v2 = vpop.f32.mrf.mxu0  ;;  %v2568_v14 = vpop.f32.mrf.mxu1 }
 0x371   : > { %v2570_v16 = vpop.f32.mrf.mxu0  ;;  %v2572_v32 = vpop.f32.mrf.mxu1 }
 0x372   : > { %v1351_v10 = vpack.c.bf16 %v2570_v16, %v2566_v2  ;;  %v1352_v23 = vpack.c.bf16 %v2572_v32, %v2568_v14 }
 0x379   : > { %v1266_v58 = vpop.f32.mrf.mxu0  ;;  %v1315_v61 = vpop.f32.mrf.mxu1 }
 0x381   : > { %v1268_v63 = vpop.f32.mrf.mxu0  ;;  %v1317_v46 = vpop.f32.mrf.mxu1 }
 0x382   : > { %v1353_v48 = vpack.c.bf16 %v1268_v63, %v1266_v58  ;;  %v1354_v25 = vpack.c.bf16 %v1317_v46, %v1315_v61 }
 0x389   : > { %v1271_v40 = vpop.f32.mrf.mxu0  ;;  %v1320_v24 = vpop.f32.mrf.mxu1 }
 0x391   : > { %v1273_v0 = vpop.f32.mrf.mxu0  ;;  %v1322_v57 = vpop.f32.mrf.mxu1 }
 0x392   : > { %v1355_v12 = vpack.c.bf16 %v1273_v0, %v1271_v40  ;;  %v1356_v41 = vpack.c.bf16 %v1322_v57, %v1320_v24 }
 0x399   : > { %v1276_v37 = vpop.f32.mrf.mxu0  ;;  %v1325_v18 = vpop.f32.mrf.mxu1 }
 0x3a1   : > { %v1278_v35 = vpop.f32.mrf.mxu0  ;;  %v1327_v19 = vpop.f32.mrf.mxu1 }
 0x3a2   : > { %v1357_v29 = vpack.c.bf16 %v1278_v35, %v1276_v37  ;;  %v1358_v17 = vpack.c.bf16 %v1327_v19, %v1325_v18 }
 0x3a9   : > { %v1281_v1 = vpop.f32.mrf.mxu0  ;;  %v1330_v13 = vpop.f32.mrf.mxu1 }
 0x3b1   : > { %v1283_v4 = vpop.f32.mrf.mxu0  ;;  %v1332_v55 = vpop.f32.mrf.mxu1 }
 0x3b2   : > { %v1359_v22 = vpack.c.bf16 %v1283_v4, %v1281_v1  ;;  %v1360_v5 = vpack.c.bf16 %v1332_v55, %v1330_v13 }
 0x3b9   : > { %v1286_v44 = vpop.f32.mrf.mxu0  ;;  %v1335_v39 = vpop.f32.mrf.mxu1 }
 0x3c1   : > { %v1288_v38 = vpop.f32.mrf.mxu0  ;;  %v1337_v15 = vpop.f32.mrf.mxu1 }
 0x3c2   : > { %v1361_v53 = vpack.c.bf16 %v1288_v38, %v1286_v44  ;;  %v1362_v59 = vpack.c.bf16 %v1337_v15, %v1335_v39 }
 0x3c9   : > { %v1291_v47 = vpop.f32.mrf.mxu0  ;;  %v1340_v36 = vpop.f32.mrf.mxu1 }
 0x3d1   : > { %v1293_v30 = vpop.f32.mrf.mxu0  ;;  %v1342_v50 = vpop.f32.mrf.mxu1 }
 0x3d2   : > { %v1363_v56 = vpack.c.bf16 %v1293_v30, %v1291_v47  ;;  %v1364_v11 = vpack.c.bf16 %v1342_v50, %v1340_v36 }
 0x3d9   : > { %v1296_v27 = vpop.f32.mrf.mxu0  ;;  %v1345_v7 = vpop.f32.mrf.mxu1 }
 0x3e1   : > { %v1298_v43 = vpop.f32.mrf.mxu0  ;;  %v1347_v62 = vpop.f32.mrf.mxu1 }
 0x3e2   : > { %v1365_v42 = vpack.c.bf16 %v1298_v43, %v1296_v27  ;;  %v1366_v20 = vpack.c.bf16 %v1347_v62, %v1345_v7 }
 0x3e4   : > { %1373 = vmatpush.bf16.msrb.mxu2 %v1365_v42  ;;  %1386 = vmatpush.bf16.msrb.mxu3 %v1366_v20 }
 0x3e8   : > { %1374 = vmatpush.bf16.msrb.mxu2 %v1363_v56  ;;  %1387 = vmatpush.bf16.msrb.mxu3 %v1364_v11 }
 0x3ec   : > { %1375 = vmatpush.bf16.msrb.mxu2 %v1361_v53  ;;  %1388 = vmatpush.bf16.msrb.mxu3 %v1362_v59 }
 0x3f0   : > { %1376 = vmatpush.bf16.msrb.mxu2 %v1359_v22  ;;  %1389 = vmatpush.bf16.msrb.mxu3 %v1360_v5 }
 0x3f4   : > { %1377 = vmatpush.bf16.msrb.mxu2 %v1357_v29  ;;  %1390 = vmatpush.bf16.msrb.mxu3 %v1358_v17 }
 0x3f8   : > { %1378 = vmatpush.bf16.msrb.mxu2 %v1355_v12  ;;  %1391 = vmatpush.bf16.msrb.mxu3 %v1356_v41 }
 0x3fc   : > { %1379 = vmatpush.bf16.msrb.mxu2 %v1353_v48  ;;  %1392 = vmatpush.bf16.msrb.mxu3 %v1354_v25 }
 0x400   : > { %1380 = vmatpush.bf16.msrb.mxu2 %v1351_v10  ;;  %1393 = vmatpush.bf16.msrb.mxu3 %v1352_v23 }
 0x403   : > { %1381 = vmatmul.bf16.vlgmr.msrb.gmra.mxu2 %v1350_v8  ;;  %1394 = vmatmul.bf16.vlgmr.msrb.gmra.mxu3 %v1350_v8 }
 0x486   : > { %v1382_v6 = vpop.f32.mrf.mxu2  ;;  %v1395_v60 = vpop.f32.mrf.mxu3 }
 0x487   : > { %v1383_v52 = vadd.f32 %v1382_v6, %v1371_v54  ;;  %v1396_v45 = vadd.f32 %v1395_v60, %v1371_v54 }
 0x489   : > { %1399 = vst [vmem:[%s271_s29] sm:$0xff] %v1383_v52 }
 0x48a   : > { %1400 = vst [vmem:[%s271_s29 + $0x8] sm:$0xff] %v1396_v45 }
 0x48b   : > { %1882 = shalt.err (!%p1879_p3)
}
 0x48c   : > { %1717 = dma.vmem_to_hbm [thread:$0]  (%p2000_p5), %s1416_s8, 256, %s1418_s9, %s1402_s13  }
 0x48e   : > { %v1384_v28 = vpop.f32.mrf.mxu2  ;;  %v1397_v31 = vpop.f32.mrf.mxu3 }
 0x48f PF: > { %p1723_p4 = scmp.ge.s32.totalorder %s1917_s27, 2  ;;  %s1429_s18 = sand.u32 1, %s1905_s24  }
 0x490   : > { %s1430_s21 = scalar_lea.sflag [#allocation3], %s1429_s18 }
 0x491   : > { %p1720_p7 = pnand %p1723_p4, %p2004_p6 }
 0x493   : > { %p1721_p8 = pneg %p1720_p7 }
 0x495   : > { %1900 = dma.done.wait (%p1721_p8), %s1430_s21, 256  }
 0x496   : > { %1902 = vsyncadd (%p1721_p8), %s1430_s21, 4294967040  ;;  %p17_p5 = scmp.ge.s32.totalorder %s1987_s30, 4   ;;  %s2649_s24 = smov %s1909_s25 }
 0x497   : > { %s2650_s25 = smov %s1913_s26  ;;  %s2651_s26 = smov %s1998_s10 }
 0x498   : > { %s2652_s27 = smov %s1987_s30  ;;  %19 = sbr.rel (!%p17_p5) target bundleno = 3 (0x3), region = 83 }
 0x49d   :  { %1436 = vsyncpa [#allocation3], 1 }
 0x49e   :  { %1438 = vsyncpa [#allocation3 + $0x1], 1 }

</bundles_post_ra>
